<compile_context>
chip_gen: v5e
topology: v5e:2x2
jax: 0.10.0
libtpu: 0.0.40
codegen_flags: <defaults>
</compile_context>

<pallas_src>
import functools
import math

import jax
import jax.numpy as jnp
from jax.experimental import pallas as pl
from jax.experimental.pallas import tpu as pltpu


# ------------------------------ kernel ---------------------------------------
def _label_smoothing_kernel(x_ref, tgt_ref, loss_ref, td_ref, *,
                            padding_idx, confidence, fill, row_entropy,
                            vocab_size, need_pad_mask):
    """One (tm, tv) tile: emit the true_dist tile; accumulate per-row KL loss
    across the vocab (reduction) grid axis."""
    j = pl.program_id(1)

    x = x_ref[...].astype(jnp.float32)               # (tm, tv)
    t = tgt_ref[...]                                 # (tm, 1) int32
    tm, tv = x.shape

    col = jax.lax.broadcasted_iota(jnp.int32, (tm, tv), 1) + j * tv
    td = jnp.where(col == t, jnp.float32(confidence), jnp.float32(fill))
    td = jnp.where(col == padding_idx, jnp.float32(0.0), td)
    if need_pad_mask:                                # static: only if V was padded
        td = jnp.where(col < vocab_size, td, jnp.float32(0.0))
    row_valid = t != padding_idx                     # (tm, 1) bool
    td = jnp.where(row_valid, td, jnp.float32(0.0))  # zero rows at padding_idx

    td_ref[...] = td.astype(td_ref.dtype)

    # Per-row KLDiv(sum):  row_valid * row_entropy - sum_cols(td * x)
    @pl.when(j == 0)
    def _init():
        loss_ref[...] = row_valid.astype(jnp.float32) * jnp.float32(row_entropy)

    loss_ref[...] -= jnp.sum(td * x, axis=1, keepdims=True)


# ------------------------------ tiling helpers --------------------------------
def _vmem_budget_bytes():
    """(tile budget, scoped vmem limit) derived from the actual chip."""
    try:
        cap = int(pltpu.get_tpu_info().vmem_capacity_bytes)
    except Exception:
        cap = 64 << 20                               # conservative (v7x per-TC VMEM)
    return int(cap * 0.4), int(cap * 0.8)


def _choose_tiles(n_rows, v_pad, x_itemsize, td_itemsize, budget_bytes,
                  row_target=512):
    """Pick (tm, tv): lane-dense 128-multiple vocab tile, >=row_target rows if
    the budget allows, tm a multiple-of-8 divisor of n_rows (or n_rows)."""
    # Per-element cost model: 2 pipeline buffers each for the x and td tiles
    # plus f32 temporaries built inside the kernel.
    bytes_per_elem = 2 * x_itemsize + 2 * td_itemsize + 8

    def rows_fit(tv):
        return (budget_bytes // (bytes_per_elem * tv)) // 8 * 8

    want = min(row_target, max(8, n_rows))
    tv = v_pad
    if rows_fit(tv) < want:
        # Tile the vocab: largest 128-multiple divisor of v_pad that still
        # allows ~want rows per tile (prevents VMEM OOM at large vocabularies).
        best = 128
        cand = 256
        while cand <= v_pad:
            if v_pad % cand == 0 and rows_fit(cand) >= want:
                best = cand
            cand += 128
        tv = best

    tm = min(n_rows, max(8, rows_fit(tv)))
    tm -= tm % 8
    while tm >= 8 and n_rows % tm != 0:
        tm -= 8
    if tm < 8 or n_rows % tm != 0:
        tm = n_rows                                  # full dim is always legal
    return tm, tv


# ------------------------------ wrapper ---------------------------------------
def label_smoothing_forward(x, target, *, size, padding_idx, smoothing,
                            true_dist_dtype=None, block_rows=None,
                            block_vocab=None):
    """Pallas forward of LabelSmoothing.

    x: (N, size) log-probabilities, target: (N,) int class ids.
    Returns (loss_scalar, true_dist) with loss == KLDivLoss(size_average=False).
    """
    n, v = x.shape
    assert v == size
    assert size > 2, "smoothing / (size - 2) requires size > 2"
    confidence = 1.0 - smoothing
    fill = smoothing / (size - 2)
    # sum of td*log(td) for one valid row: `confidence` at the target column,
    # `fill` at the remaining (size - 2) non-padding columns.
    row_entropy = 0.0
    if confidence > 0.0:
        row_entropy += confidence * math.log(confidence)
    if fill > 0.0:
        row_entropy += (size - 2) * fill * math.log(fill)

    td_dtype = jnp.dtype(true_dist_dtype) if true_dist_dtype is not None else x.dtype

    # Lane-dense vocab: pad to a multiple of 128 (pad columns masked to zero
    # inside the kernel and sliced off on return).
    v_pad = ((v + 127) // 128) * 128
    x_in = x if v_pad == v else jnp.pad(x, ((0, 0), (0, v_pad - v)))

    budget, vmem_limit = _vmem_budget_bytes()
    tm, tv = _choose_tiles(n, v_pad, x_in.dtype.itemsize, td_dtype.itemsize, budget)
    if block_rows is not None:
        tm = block_rows
    if block_vocab is not None:
        tv = block_vocab
    assert n % tm == 0, f"block_rows={tm} must divide n_rows={n}"
    assert v_pad % tv == 0, f"block_vocab={tv} must divide padded vocab={v_pad}"

    grid = (n // tm, v_pad // tv)

    kernel = functools.partial(
        _label_smoothing_kernel,
        padding_idx=padding_idx, confidence=confidence, fill=fill,
        row_entropy=row_entropy, vocab_size=v, need_pad_mask=(v_pad != v))

    row_loss, true_dist = pl.pallas_call(
        kernel,
        out_shape=(
            jax.ShapeDtypeStruct((n, 1), jnp.float32),       # per-row loss partials
            jax.ShapeDtypeStruct((n, v_pad), td_dtype),      # true_dist (lane-padded)
        ),
        grid=grid,
        in_specs=[
            pl.BlockSpec((tm, tv), lambda i, j: (i, j)),     # x tile
            pl.BlockSpec((tm, 1), lambda i, j: (i, 0)),      # target rows
        ],
        out_specs=(
            pl.BlockSpec((tm, 1), lambda i, j: (i, 0)),      # resident per-row loss
            pl.BlockSpec((tm, tv), lambda i, j: (i, j)),     # true_dist tile
        ),
        compiler_params=pltpu.CompilerParams(
            # Row axis shards across TensorCores (v7x megacore) -- safe because
            # each row tile owns its own loss block. Vocab axis is the loss
            # reduction axis (resident accumulator) -> "arbitrary", kept last.
            dimension_semantics=("parallel", "arbitrary"),
            vmem_limit_bytes=vmem_limit,
        ),
    )(x_in, target.reshape(n, 1).astype(jnp.int32))

    loss = jnp.sum(row_loss)
    if v_pad != v:
        true_dist = true_dist[:, :v]
    return loss, true_dist


# ------------------------------ reference & main ------------------------------
def ref_label_smoothing(x, target, size, padding_idx, smoothing):
    confidence = 1.0 - smoothing
    fill = smoothing / (size - 2)
    n, v = x.shape
    td = jnp.full((n, v), fill, dtype=x.dtype)
    td = td.at[jnp.arange(n), target].set(confidence)
    td = td.at[:, padding_idx].set(0.0)
    td = jnp.where((target == padding_idx)[:, None], 0.0, td)
    safe = jnp.where(td > 0, td, 1.0)
    loss = jnp.sum(jnp.where(td > 0, td * (jnp.log(safe) - x), 0.0))
    return loss, td


def _check(x, target, size, padding_idx, smoothing, **kw):
    loss, td = label_smoothing_forward(
        x, target, size=size, padding_idx=padding_idx, smoothing=smoothing, **kw)
    loss = jax.block_until_ready(loss)
    td = jax.block_until_ready(td)
    ref_loss, ref_td = ref_label_smoothing(x, target, size, padding_idx, smoothing)
    assert td.shape == x.shape
    assert jnp.allclose(td, ref_td, atol=1e-6)
    assert jnp.allclose(loss, ref_loss, rtol=1e-4, atol=1e-3)


if __name__ == "__main__":
    key = jax.random.PRNGKey(0)

    # Test A: lane-aligned vocab, auto tiling (single big tile).
    N, V = 256, 128
    k1, k2, k3, k4 = jax.random.split(key, 4)
    logits = jax.random.normal(k1, (N, V), jnp.float32)
    x = jax.nn.log_softmax(logits, axis=-1)          # KLDivLoss expects log-probs
    target = jax.random.randint(k2, (N,), 0, V, dtype=jnp.int32)
    target = target.at[:5].set(0)                    # exercise the padding path
    _check(x, target, V, 0, 0.1)

    # Test B: same data, forced multi-row-tile grid (parallel row axis).
    _check(x, target, V, 0, 0.1, block_rows=64)

    # Test C: vocab not a multiple of 128 (lane-pad path) + multi vocab tiles
    # (exercises the resident per-row loss accumulator across the "arbitrary"
    # reduction axis).
    N2, V2 = 64, 352                                 # pads to 384 = 3 * 128
    logits2 = jax.random.normal(k3, (N2, V2), jnp.float32)
    x2 = jax.nn.log_softmax(logits2, axis=-1)
    target2 = jax.random.randint(k4, (N2,), 0, V2, dtype=jnp.int32)
    target2 = target2.at[:3].set(0)
    _check(x2, target2, V2, 0, 0.2, block_rows=32, block_vocab=128)

    print("KERNEL_OK")
</pallas_src>

<mosaic_0001>
module attributes {stable_mosaic.version = 11 : i64} {
  func.func @_label_smoothing_kernel(%arg0: i32, %arg1: i32, %arg2: memref<256x128xf32, #tpu.memory_space<vmem>>, %arg3: memref<256x1xi32, #tpu.memory_space<vmem>>, %arg4: memref<256x1xf32, #tpu.memory_space<vmem>>, %arg5: memref<256x128xf32, #tpu.memory_space<vmem>>) attributes {dimension_semantics = [#tpu.dimension_semantics<parallel>, #tpu.dimension_semantics<arbitrary>], iteration_bounds = array<i64: 1, 1>, scalar_prefetch = 0 : i64, scratch_operands = 0 : i64, tpu.core_type = #tpu.core_type<tc>, window_params = [{transform_indices = @transform_0, window_bounds = array<i64: 256, 128>}, {transform_indices = @transform_1, window_bounds = array<i64: 256, 1>}, {transform_indices = @transform_2, window_bounds = array<i64: 256, 1>}, {transform_indices = @transform_3, window_bounds = array<i64: 256, 128>}]} {
    %c0 = arith.constant 0 : index
    %c0_0 = arith.constant 0 : index
    %0 = vector.load %arg2[%c0, %c0_0] : memref<256x128xf32, #tpu.memory_space<vmem>>, vector<256x128xf32>
    %c0_1 = arith.constant 0 : index
    %c0_2 = arith.constant 0 : index
    %1 = vector.load %arg3[%c0_1, %c0_2] : memref<256x1xi32, #tpu.memory_space<vmem>>, vector<256x1xi32>
    %2 = tpu.iota {dimensions = array<i32: 1>} : vector<256x128xi32>
    %c128_i32 = arith.constant 128 : i32
    %3 = arith.muli %arg1, %c128_i32 : i32
    %4 = vector.broadcast %3 : i32 to vector<256x128xi32>
    %5 = arith.addi %2, %4 : vector<256x128xi32>
    %6 = vector.broadcast %1 : vector<256x1xi32> to vector<256x128xi32>
    %7 = arith.cmpi eq, %5, %6 : vector<256x128xi32>
    %cst = arith.constant 0.899999976 : f32
    %cst_3 = arith.constant 7.93650805E-4 : f32
    %8 = vector.broadcast %cst : f32 to vector<256x128xf32>
    %9 = vector.broadcast %cst_3 : f32 to vector<256x128xf32>
    %10 = arith.select %7, %8, %9 : vector<256x128xi1>, vector<256x128xf32>
    %c0_i32 = arith.constant 0 : i32
    %11 = vector.broadcast %c0_i32 : i32 to vector<256x128xi32>
    %12 = arith.cmpi eq, %5, %11 : vector<256x128xi32>
    %cst_4 = arith.constant 0.000000e+00 : f32
    %13 = vector.broadcast %cst_4 : f32 to vector<256x128xf32>
    %14 = arith.select %12, %13, %10 : vector<256x128xi1>, vector<256x128xf32>
    %c0_i32_5 = arith.constant 0 : i32
    %15 = vector.broadcast %c0_i32_5 : i32 to vector<256x1xi32>
    %16 = arith.cmpi ne, %1, %15 : vector<256x1xi32>
    %cst_6 = arith.constant 0.000000e+00 : f32
    %17 = vector.shape_cast %16 : vector<256x1xi1> to vector<256x1xi1>
    %18 = vector.broadcast %17 : vector<256x1xi1> to vector<256x128xi1>
    %19 = vector.broadcast %cst_6 : f32 to vector<256x128xf32>
    %20 = arith.select %18, %14, %19 : vector<256x128xi1>, vector<256x128xf32>
    %c0_7 = arith.constant 0 : index
    %c0_8 = arith.constant 0 : index
    %21 = vector.load %arg5[%c0_7, %c0_8] : memref<256x128xf32, #tpu.memory_space<vmem>>, vector<256x128xf32>
    tpu.vector_store %arg5[%c0_7, %c0_8], %20 {strides = array<i32>} : memref<256x128xf32, #tpu.memory_space<vmem>>, vector<256x128xf32>,
    %c0_i32_9 = arith.constant 0 : i32
    %22 = arith.cmpi eq, %arg1, %c0_i32_9 : i32
    %23 = arith.extui %22 : i1 to i32
    %c0_i32_10 = arith.constant 0 : i32
    %24 = arith.cmpi ne, %23, %c0_i32_10 : i32
    scf.if %24 {
      %31 = arith.extui %16 : vector<256x1xi1> to vector<256x1xi32>
      %32 = arith.sitofp %31 : vector<256x1xi32> to vector<256x1xf32>
      %cst_16 = arith.constant -0.808711171 : f32
      %33 = vector.broadcast %cst_16 : f32 to vector<256x1xf32>
      %34 = arith.mulf %32, %33 : vector<256x1xf32>
      %c0_17 = arith.constant 0 : index
      %c0_18 = arith.constant 0 : index
      %35 = vector.load %arg4[%c0_17, %c0_18] : memref<256x1xf32, #tpu.memory_space<vmem>>, vector<256x1xf32>
      tpu.vector_store %arg4[%c0_17, %c0_18], %34 {strides = array<i32>} : memref<256x1xf32, #tpu.memory_space<vmem>>, vector<256x1xf32>,
    } else {
    }
    %c0_11 = arith.constant 0 : index
    %c0_12 = arith.constant 0 : index
    %25 = vector.load %arg4[%c0_11, %c0_12] : memref<256x1xf32, #tpu.memory_space<vmem>>, vector<256x1xf32>
    %26 = arith.mulf %20, %0 : vector<256x128xf32>
    %cst_13 = arith.constant dense<0.000000e+00> : vector<256xf32>
    %27 = vector.multi_reduction <add>, %26, %cst_13 [1] : vector<256x128xf32> to vector<256xf32>
    %28 = vector.shape_cast %27 : vector<256xf32> to vector<256x1xf32>
    %29 = arith.subf %25, %28 : vector<256x1xf32>
    %c0_14 = arith.constant 0 : index
    %c0_15 = arith.constant 0 : index
    %30 = vector.load %arg4[%c0_14, %c0_15] : memref<256x1xf32, #tpu.memory_space<vmem>>, vector<256x1xf32>
    tpu.vector_store %arg4[%c0_14, %c0_15], %29 {strides = array<i32>} : memref<256x1xf32, #tpu.memory_space<vmem>>, vector<256x1xf32>,
    return
  }
  func.func @transform_0(%arg0: i32, %arg1: i32) -> (i32, i32) {
    %c0_i32 = arith.constant 0 : i32
    return %arg0, %arg1 : i32, i32
  }
  func.func @transform_1(%arg0: i32, %arg1: i32) -> (i32, i32) {
    %c0_i32 = arith.constant 0 : i32
    %c0_i32_0 = arith.constant 0 : i32
    return %arg0, %c0_i32 : i32, i32
  }
  func.func @transform_2(%arg0: i32, %arg1: i32) -> (i32, i32) {
    %c0_i32 = arith.constant 0 : i32
    %c0_i32_0 = arith.constant 0 : i32
    return %arg0, %c0_i32 : i32, i32
  }
  func.func @transform_3(%arg0: i32, %arg1: i32) -> (i32, i32) {
    %c0_i32 = arith.constant 0 : i32
    return %arg0, %arg1 : i32, i32
  }
}

</mosaic_0001>

<bundles_post_ra>
// kernel: tpu_custom_call.1
= control target key start
LH: loop header
LB: loop body
LE: loop exit
PB: predicated region body
PF: predicated region fallthrough
CT: control target
= control target key end

     0   :  { %v915_v3 = vmov 0   ;;  %v916_v4 = vmov 0.0   ;;  %vm600_vm3 = vcmask 7168   ;;  %s2078_s0 = inlined_call_operand.vmem [shape: f32[256,128], index: 0, kind: input, shape index: {}]   ;;  %s2079_s1 = inlined_call_operand.vmem [shape: s32[256,1], index: 1, kind: input, shape index: {}]   ;;  %s2080_s2 = inlined_call_operand.vmem [shape: f32[256,1], index: 2, kind: output, shape index: {0}]   ;;  %s2081_s3 = inlined_call_operand.hbm [shape: f32[256,128], index: 3, kind: output, shape index: {1}]  }
   0x1   :  { %v944_v0 = vld [vmem:[%s2079_s1 + $0x20] sm:$0xff]  ;;  %v949_v1 = vld [vmem:[%s2079_s1 + $0x10] sm:$0xff]  ;;  %888 = vset.pattern.permute.xlu2 %v915_v3  ;;  %887 = vset.pattern.permute.xlu1 %v915_v3 }
   0x2   :  { %v954_v2 = vld [vmem:[%s2079_s1] sm:$0xff]  ;;  %vm280_vm0 = vcmp.ne.s32.totalorder %v944_v0, 0  ;;  %vm278_vm1 = vcmp.ne.s32.totalorder %v949_v1, 0  ;;  %886 = vset.pattern.permute.xlu0 %v915_v3  ;;  %96 = vperm.xlu2 %888, %v944_v0  }
   0x3   :  { %vm276_vm2 = vcmp.ne.s32.totalorder %v954_v2, 0  ;;  %v852_v5 = vsel %vm280_vm0, 1.0, %v916_v4  ;;  %v850_v6 = vsel %vm278_vm1, 1.0, %v916_v4  ;;  %90 = vperm.xlu1 %887, %v949_v1   ;;  %84 = vperm.xlu0 %886, %v954_v2  }
   0x4   :  { %v848_v7 = vsel %vm276_vm2, 1.0, %v916_v4  ;;  %v572_v8 = vmul.f32 -0.8087112, %v852_v5  ;;  %v570_v9 = vmul.f32 -0.8087112, %v850_v6 }
   0x5   :  { %v568_v10 = vmul.f32 -0.8087112, %v848_v7 }
   0x6   :  { %605 = vst.msk [vmem:[%s2080_s2 + $0x20] sm:$0xff] %vm600_vm3, %v572_v8 }
   0x7   :  { %603 = vst.msk [vmem:[%s2080_s2 + $0x10] sm:$0xff] %vm600_vm3, %v570_v9 }
   0x8   :  { %9 = vsyncpa [#allocation3], 0  ;;  %601 = vst.msk [vmem:[%s2080_s2] sm:$0xff] %vm600_vm3, %v568_v10  ;;  %v989_v11 = vld [vmem:[%s2079_s1 + $0x28] sm:$0xff]  ;;  %v994_v12 = vld [vmem:[%s2079_s1 + $0x18] sm:$0xff]  ;;  %v308_v52 = vsel %vm276_vm2, 1, %v915_v3 }
   0x9   :  { %v999_v13 = vld [vmem:[%s2079_s1 + $0x8] sm:$0xff]  ;;  %v1007_v14 = vld [vmem:[%s2079_s1 + $0x40] sm:$0xff]  ;;  %v1012_v15 = vld [vmem:[%s2079_s1 + $0x38] sm:$0xff]  ;;  %vm279_vm5 = vcmp.ne.s32.totalorder %v994_v12, 0  ;;  %vm281_vm6 = vcmp.ne.s32.totalorder %v989_v11, 0  ;;  %v310_v62 = vsel %vm278_vm1, 1, %v915_v3 }
   0xa   :  { %99 = vperm.xlu2 %888, %v989_v11   ;;  %v1017_v16 = vld [vmem:[%s2079_s1 + $0x30] sm:$0xff]  ;;  %v1025_v17 = vld [vmem:[%s2079_s1 + $0x58] sm:$0xff]  ;;  %v1035_v19 = vld [vmem:[%s2079_s1 + $0x48] sm:$0xff]  ;;  %vm277_vm4 = vcmp.ne.s32.totalorder %v999_v13, 0  ;;  %v851_v33 = vsel %vm279_vm5, 1.0, %v916_v4  ;;  %v853_v37 = vsel %vm281_vm6, 1.0, %v916_v4 }
   0xb   :  { %93 = vperm.xlu1 %887, %v994_v12   ;;  %87 = vperm.xlu0 %886, %v999_v13   ;;  %v1030_v18 = vld [vmem:[%s2079_s1 + $0x50] sm:$0xff]  ;;  %v1048_v21 = vld [vmem:[%s2079_s1 + $0x68] sm:$0xff]  ;;  %v1053_v22 = vld [vmem:[%s2079_s1 + $0x60] sm:$0xff]  ;;  %v849_v32 = vsel %vm277_vm4, 1.0, %v916_v4  ;;  %v571_v35 = vmul.f32 -0.8087112, %v851_v33 }
   0xc   :  { %v1043_v20 = vld [vmem:[%s2079_s1 + $0x70] sm:$0xff]  ;;  %v1061_v23 = vld [vmem:[%s2079_s1 + $0x88] sm:$0xff]  ;;  %v1066_v24 = vld [vmem:[%s2079_s1 + $0x80] sm:$0xff]  ;;  %v569_v34 = vmul.f32 -0.8087112, %v849_v32  ;;  %vm282_vm7 = vcmp.ne.s32.totalorder %v1017_v16, 0 }
   0xd   :  { %v1071_v25 = vld [vmem:[%s2079_s1 + $0x78] sm:$0xff]  ;;  %v1079_v26 = vld [vmem:[%s2079_s1 + $0xa0] sm:$0xff]  ;;  %v1089_v28 = vld [vmem:[%s2079_s1 + $0x90] sm:$0xff]  ;;  %604 = vst.msk [vmem:[%s2080_s2 + $0x18] sm:$0xff] %vm600_vm3, %v571_v35  ;;  %v573_v40 = vmul.f32 -0.8087112, %v853_v37 }
   0xe   :  { %v1084_v27 = vld [vmem:[%s2079_s1 + $0x98] sm:$0xff]  ;;  %v1102_v30 = vld [vmem:[%s2079_s1 + $0xb0] sm:$0xff]  ;;  %v1107_v31 = vld [vmem:[%s2079_s1 + $0xa8] sm:$0xff]  ;;  %602 = vst.msk [vmem:[%s2080_s2 + $0x8] sm:$0xff] %vm600_vm3, %v569_v34  ;;  %v854_v41 = vsel %vm282_vm7, 1.0, %v916_v4  ;;  %vm284_vm8 = vcmp.ne.s32.totalorder %v1007_v14, 0 }
   0xf   :  { %v1097_v29 = vld [vmem:[%s2079_s1 + $0xb8] sm:$0xff]  ;;  %v1128_v36 = vld [vmem:[%s2079_s1 + $0xd0] sm:$0xff]  ;;  %v1140_v38 = vld [vmem:[%s2079_s1 + $0xc8] sm:$0xff]  ;;  %606 = vst.msk [vmem:[%s2080_s2 + $0x28] sm:$0xff] %vm600_vm3, %v573_v40  ;;  %v574_v42 = vmul.f32 -0.8087112, %v854_v41 }
  0x10   :  { %v1145_v39 = vld [vmem:[%s2079_s1 + $0xc0] sm:$0xff]  ;;  %v1166_v43 = vld [vmem:[%s2079_s1 + $0xe8] sm:$0xff]  ;;  %v856_v44 = vsel %vm284_vm8, 1.0, %v916_v4  ;;  %v1179_v46 = vld [vmem:[%s2079_s1 + $0xd8] sm:$0xff]  ;;  %vm283_vm9 = vcmp.ne.s32.totalorder %v1012_v15, 0  ;;  %vm285_vm10 = vcmp.ne.s32.totalorder %v1035_v19, 0 }
  0x11   :  { %607 = vst.msk [vmem:[%s2080_s2 + $0x30] sm:$0xff] %vm600_vm3, %v574_v42  ;;  %v1174_v45 = vld [vmem:[%s2079_s1 + $0xe0] sm:$0xff]  ;;  %v576_v47 = vmul.f32 -0.8087112, %v856_v44  ;;  %v855_v48 = vsel %vm283_vm9, 1.0, %v916_v4  ;;  %v857_v49 = vsel %vm285_vm10, 1.0, %v916_v4 }
  0x12   :  { %108 = vperm.xlu2 %888, %v1007_v14   ;;  %v575_v50 = vmul.f32 -0.8087112, %v855_v48  ;;  %v577_v51 = vmul.f32 -0.8087112, %v857_v49  ;;  %vm287_vm11 = vcmp.ne.s32.totalorder %v1025_v17, 0  ;;  %v1214_v54 = vld [vmem:[%s2079_s1 + $0xf8] sm:$0xff] }
  0x13   :  { %105 = vperm.xlu1 %887, %v1012_v15   ;;  %102 = vperm.xlu0 %886, %v1017_v16   ;;  %609 = vst.msk [vmem:[%s2080_s2 + $0x40] sm:$0xff] %vm600_vm3, %v576_v47  ;;  %v859_v53 = vsel %vm287_vm11, 1.0, %v916_v4  ;;  %v1219_v55 = vld [vmem:[%s2079_s1 + $0xf0] sm:$0xff]  ;;  %vm286_vm12 = vcmp.ne.s32.totalorder %v1030_v18, 0  ;;  %vm288_vm13 = vcmp.ne.s32.totalorder %v1053_v22, 0  ;;  %v311_v61 = vsel %vm279_vm5, 1, %v915_v3 }
  0x14   :  { %608 = vst.msk [vmem:[%s2080_s2 + $0x38] sm:$0xff] %vm600_vm3, %v575_v50  ;;  %v579_v56 = vmul.f32 -0.8087112, %v859_v53  ;;  %v858_v57 = vsel %vm286_vm12, 1.0, %v916_v4  ;;  %v860_v58 = vsel %vm288_vm13, 1.0, %v916_v4  ;;  %vm290_vm14 = vcmp.ne.s32.totalorder %v1043_v20, 0 }
  0x15   :  { %610 = vst.msk [vmem:[%s2080_s2 + $0x48] sm:$0xff] %vm600_vm3, %v577_v51  ;;  %v578_v59 = vmul.f32 -0.8087112, %v858_v57  ;;  %v580_v60 = vmul.f32 -0.8087112, %v860_v58  ;;  %v309_v63 = vsel %vm277_vm4, 1, %v915_v3 }
  0x16   :  { %612 = vst.msk [vmem:[%s2080_s2 + $0x58] sm:$0xff] %vm600_vm3, %v579_v56  ;;  %v862_v2 = vsel %vm290_vm14, 1.0, %v916_v4  ;;  %vm289_vm15 = vcmp.ne.s32.totalorder %v1048_v21, 0  ;;  %vm291_vm2 = vcmp.ne.s32.totalorder %v1071_v25, 0  ;;  %v314_v10 = vsel %vm282_vm7, 1, %v915_v3  ;;  %s918_s7 = smov [#allocation2]  }
  0x17   :  { %611 = vst.msk [vmem:[%s2080_s2 + $0x50] sm:$0xff] %vm600_vm3, %v578_v59  ;;  %v582_v5 = vmul.f32 -0.8087112, %v862_v2  ;;  %v861_v1 = vsel %vm289_vm15, 1.0, %v916_v4  ;;  %v863_v6 = vsel %vm291_vm2, 1.0, %v916_v4  ;;  %vm293_vm1 = vcmp.ne.s32.totalorder %v1061_v23, 0 }
  0x18   :  { %613 = vst.msk [vmem:[%s2080_s2 + $0x60] sm:$0xff] %vm600_vm3, %v580_v60  ;;  %v581_v8 = vmul.f32 -0.8087112, %v861_v1  ;;  %v583_v9 = vmul.f32 -0.8087112, %v863_v6  ;;  %v313_v12 = vsel %vm281_vm6, 1, %v915_v3 }
  0x19   :  { %615 = vst.msk [vmem:[%s2080_s2 + $0x70] sm:$0xff] %vm600_vm3, %v582_v5  ;;  %v312_v13 = vsel %vm280_vm0, 1, %v915_v3  ;;  %v865_v16 = vsel %vm293_vm1, 1.0, %v916_v4  ;;  %vm292_vm4 = vcmp.ne.s32.totalorder %v1066_v24, 0  ;;  %vm294_vm5 = vcmp.ne.s32.totalorder %v1089_v28, 0  ;;  %s832_s8 = sshll.u32 %s918_s7, 4  ;;  %s833_s8 = int_to_ptr.vmem [resolvable:$true] %s832_s8 }
  0x1a   :  { %117 = vperm.xlu2 %888, %v1025_v17   ;;  %614 = vst.msk [vmem:[%s2080_s2 + $0x68] sm:$0xff] %vm600_vm3, %v581_v8  ;;  %v585_v32 = vmul.f32 -0.8087112, %v865_v16  ;;  %v864_v0 = vsel %vm292_vm4, 1.0, %v916_v4  ;;  %v866_v11 = vsel %vm294_vm5, 1.0, %v916_v4  ;;  %v317_v37 = vsel %vm285_vm10, 1, %v915_v3 }
  0x1b   :  { %114 = vperm.xlu1 %887, %v1030_v18   ;;  %111 = vperm.xlu0 %886, %v1035_v19   ;;  %616 = vst.msk [vmem:[%s2080_s2 + $0x78] sm:$0xff] %vm600_vm3, %v583_v9  ;;  %v584_v34 = vmul.f32 -0.8087112, %v864_v0  ;;  %v586_v35 = vmul.f32 -0.8087112, %v866_v11  ;;  %vm296_vm0 = vcmp.ne.s32.totalorder %v1079_v26, 0 }
  0x1c   :  { %618 = vst.msk [vmem:[%s2080_s2 + $0x88] sm:$0xff] %vm600_vm3, %v585_v32  ;;  %v316_v40 = vsel %vm284_vm8, 1, %v915_v3  ;;  %v315_v41 = vsel %vm283_vm9, 1, %v915_v3  ;;  %v868_v19 = vsel %vm296_vm0, 1.0, %v916_v4  ;;  %vm295_vm6 = vcmp.ne.s32.totalorder %v1084_v27, 0  ;;  %s834_s11 = sshll.u32 %s2081_s3, 4  ;;  %s835_s11 = int_to_ptr.hbm [resolvable:$true] %s834_s11 }
  0x1d   :  { %617 = vst.msk [vmem:[%s2080_s2 + $0x80] sm:$0xff] %vm600_vm3, %v584_v34  ;;  %v588_v42 = vmul.f32 -0.8087112, %v868_v19  ;;  %vm297_vm7 = vcmp.ne.s32.totalorder %v1107_v31, 0  ;;  %v867_v14 = vsel %vm295_vm6, 1.0, %v916_v4  ;;  %v320_v49 = vsel %vm288_vm13, 1, %v915_v3 }
  0x1e   :  { %619 = vst.msk [vmem:[%s2080_s2 + $0x90] sm:$0xff] %vm600_vm3, %v586_v35  ;;  %v869_v15 = vsel %vm297_vm7, 1.0, %v916_v4  ;;  %v587_v47 = vmul.f32 -0.8087112, %v867_v14  ;;  %vm299_vm8 = vcmp.ne.s32.totalorder %v1097_v29, 0  ;;  %v319_v50 = vsel %vm287_vm11, 1, %v915_v3 }
  0x1f   :  { %621 = vst.msk [vmem:[%s2080_s2 + $0xa0] sm:$0xff] %vm600_vm3, %v588_v42  ;;  %v589_v48 = vmul.f32 -0.8087112, %v869_v15  ;;  %v318_v51 = vsel %vm286_vm12, 1, %v915_v3  ;;  %vm298_vm9 = vcmp.ne.s32.totalorder %v1102_v30, 0  ;;  %vm300_vm10 = vcmp.ne.s32.totalorder %v1145_v39, 0 }
  0x20   :  { %620 = vst.msk [vmem:[%s2080_s2 + $0x98] sm:$0xff] %vm600_vm3, %v587_v47  ;;  %v870_v17 = vsel %vm298_vm9, 1.0, %v916_v4  ;;  %v872_v18 = vsel %vm300_vm10, 1.0, %v916_v4  ;;  %v323_v60 = vsel %vm291_vm2, 1, %v915_v3  ;;  %vm302_vm11 = vcmp.ne.s32.totalorder %v1128_v36, 0  ;;  %s919_s3 = smov 128  }
  0x21   :  { %622 = vst.msk [vmem:[%s2080_s2 + $0xa8] sm:$0xff] %vm600_vm3, %v589_v48  ;;  %v590_v56 = vmul.f32 -0.8087112, %v870_v17  ;;  %v592_v57 = vmul.f32 -0.8087112, %v872_v18  ;;  %vm301_vm12 = vcmp.ne.s32.totalorder %v1140_v38, 0 }
  0x22   :  { %126 = vperm.xlu2 %888, %v1043_v20   ;;  %vm303_vm13 = vcmp.ne.s32.totalorder %v1179_v46, 0  ;;  %v873_v20 = vsel %vm301_vm12, 1.0, %v916_v4  ;;  %v326_v9 = vsel %vm294_vm5, 1, %v915_v3  ;;  %vm306_vm2 = vcmp.ne.s32.totalorder %v1219_v55, 0  ;;  %s920_s16 = smov 8  }
  0x23   :  { %123 = vperm.xlu1 %887, %v1048_v21   ;;  %120 = vperm.xlu0 %886, %v1053_v22   ;;  %v871_v22 = vsel %vm299_vm8, 1.0, %v916_v4  ;;  %623 = vst.msk [vmem:[%s2080_s2 + $0xb0] sm:$0xff] %vm600_vm3, %v590_v56  ;;  %v875_v21 = vsel %vm303_vm13, 1.0, %v916_v4  ;;  %v593_v5 = vmul.f32 -0.8087112, %v873_v20  ;;  %v329_v35 = vsel %vm297_vm7, 1, %v915_v3 }
  0x24   :  { %625 = vst.msk [vmem:[%s2080_s2 + $0xc0] sm:$0xff] %vm600_vm3, %v592_v57  ;;  %v595_v1 = vmul.f32 -0.8087112, %v875_v21  ;;  %v330_v14 = vsel %vm298_vm9, 1, %v915_v3 }
  0x25   :  { %626 = vst.msk [vmem:[%s2080_s2 + $0xc8] sm:$0xff] %vm600_vm3, %v593_v5 }
  0x26   :  { %628 = vst.msk [vmem:[%s2080_s2 + $0xd8] sm:$0xff] %vm600_vm3, %v595_v1 }
  0x2a   :  { %135 = vperm.xlu2 %888, %v1061_v23  }
  0x2b   :  { %132 = vperm.xlu1 %887, %v1066_v24   ;;  %129 = vperm.xlu0 %886, %v1071_v25   ;;  %v874_v25 = vsel %vm302_vm11, 1.0, %v916_v4  ;;  %v878_v24 = vsel %vm306_vm2, 1.0, %v916_v4 }
  0x2c   :  { %v598_v0 = vmul.f32 -0.8087112, %v878_v24 }
  0x2e   :  { %631 = vst.msk [vmem:[%s2080_s2 + $0xf0] sm:$0xff] %vm600_vm3, %v598_v0 }
  0x32   :  { %144 = vperm.xlu2 %888, %v1079_v26  }
  0x33   :  { %141 = vperm.xlu1 %887, %v1084_v27   ;;  %138 = vperm.xlu0 %886, %v1089_v28   ;;  %v332_v27 = vsel %vm300_vm10, 1, %v915_v3 }
  0x3a   :  { %153 = vperm.xlu2 %888, %v1097_v29   ;;  %v334_v29 = vsel %vm302_vm11, 1, %v915_v3 }
  0x3b   :  { %150 = vperm.xlu1 %887, %v1102_v30   ;;  %147 = vperm.xlu0 %886, %v1107_v31   ;;  %v333_v30 = vsel %vm301_vm12, 1, %v915_v3 }
  0x42   :  { %162 = vperm.xlu2 %888, %v1128_v36  }
  0x43   :  { %159 = vperm.xlu1 %887, %v1140_v38   ;;  %156 = vperm.xlu0 %886, %v1145_v39   ;;  %v335_v39 = vsel %vm303_vm13, 1, %v915_v3 }
  0x4a   :  { %171 = vperm.xlu2 %888, %v1166_v43  }
  0x4b   :  { %168 = vperm.xlu1 %887, %v1174_v45   ;;  %165 = vperm.xlu0 %886, %v1179_v46   ;;  %v338_v46 = vsel %vm306_vm2, 1, %v915_v3 }
  0x52   :  { %341 = vperm.xlu2 %888, %v308_v52   ;;  %v591_v52 = vmul.f32 -0.8087112, %v871_v22  ;;  %v78_v22 = vlaneseq }
  0x53   :  { %177 = vperm.xlu1 %887, %v1214_v54   ;;  %174 = vperm.xlu0 %886, %v1219_v55  }
  0x54   :  { %624 = vst.msk [vmem:[%s2080_s2 + $0xb8] sm:$0xff] %vm600_vm3, %v591_v52  ;;  %v1529_v17 = vand.u32 127, %v78_v22 }
  0x56   :  { %vm243_vm5 = vcmp.eq.s32.totalorder %v1529_v17, 0 }
  0x5a   :  { %350 = vperm.xlu2 %888, %v311_v61   ;;  %v322_v61 = vsel %vm290_vm14, 1, %v915_v3  ;;  %vm305_vm14 = vcmp.ne.s32.totalorder %v1166_v43, 0 }
  0x5b   :  { %347 = vperm.xlu1 %887, %v310_v62   ;;  %344 = vperm.xlu0 %886, %v309_v63   ;;  %v321_v62 = vsel %vm289_vm15, 1, %v915_v3  ;;  %v594_v63 = vmul.f32 -0.8087112, %v874_v25  ;;  %v877_v28 = vsel %vm305_vm14, 1.0, %v916_v4  ;;  %vm304_vm15 = vcmp.ne.s32.totalorder %v1174_v45, 0 }
  0x5c   :  { %v1268_v7 = vpop.permute.xlu2 %96  ;;  %v876_v23 = vsel %vm304_vm15, 1.0, %v916_v4  ;;  %v337_v36 = vsel %vm305_vm14, 1, %v915_v3  ;;  %v336_v38 = vsel %vm304_vm15, 1, %v915_v3  ;;  %v917_v45 = vmov 0.0007936508  }
  0x5d   :  { %627 = vst.msk [vmem:[%s2080_s2 + $0xd0] sm:$0xff] %vm600_vm3, %v594_v63  ;;  %v596_v32 = vmul.f32 -0.8087112, %v876_v23 }
  0x5f   :  { %629 = vst.msk [vmem:[%s2080_s2 + $0xe0] sm:$0xff] %vm600_vm3, %v596_v32 }
  0x62   :  { %359 = vperm.xlu2 %888, %v314_v10   ;;  %v325_v10 = vsel %vm293_vm1, 1, %v915_v3  ;;  %vm307_vm1 = vcmp.ne.s32.totalorder %v1214_v54, 0 }
  0x63   :  { %356 = vperm.xlu1 %887, %v313_v12   ;;  %353 = vperm.xlu0 %886, %v312_v13   ;;  %v324_v12 = vsel %vm292_vm4, 1, %v915_v3  ;;  %v597_v13 = vmul.f32 -0.8087112, %v877_v28  ;;  %v879_v31 = vsel %vm307_vm1, 1.0, %v916_v4  ;;  %v331_v4 = vsel %vm299_vm8, 1, %v915_v3 }
  0x64   :  { %v1303_v33 = vpop.permute.xlu2 %99  ;;  %v339_v43 = vsel %vm307_vm1, 1, %v915_v3 }
  0x65   :  { %630 = vst.msk [vmem:[%s2080_s2 + $0xe8] sm:$0xff] %vm600_vm3, %v597_v13 }
  0x6a   :  { %368 = vperm.xlu2 %888, %v317_v37   ;;  %v328_v37 = vsel %vm296_vm0, 1, %v915_v3 }
  0x6b   :  { %365 = vperm.xlu1 %887, %v316_v40   ;;  %362 = vperm.xlu0 %886, %v315_v41   ;;  %v327_v40 = vsel %vm295_vm6, 1, %v915_v3  ;;  %v599_v41 = vmul.f32 -0.8087112, %v879_v31 }
  0x6c   :  { %v1338_v44 = vpop.permute.xlu2 %108 }
  0x6d   :  { %632 = vst.msk [vmem:[%s2080_s2 + $0xf8] sm:$0xff] %vm600_vm3, %v599_v41 }
  0x72   :  { %377 = vperm.xlu2 %888, %v320_v49  }
  0x73   :  { %374 = vperm.xlu1 %887, %v319_v50   ;;  %371 = vperm.xlu0 %886, %v318_v51  }
  0x74   :  { %v1373_v53 = vpop.permute.xlu2 %117 }
  0x75   :  { %v1375_v58 = vpop.permute.xlu1 %90  ;;  %v1377_v59 = vpop.permute.xlu0 %84 }
  0x76   :  { %vm179_vm4 = vcmp.eq.s32.totalorder %v1529_v17, %v1377_v59  ;;  %vm181_vm12 = vcmp.eq.s32.totalorder %v1529_v17, %v1375_v58 }
  0x77   :  { %v211_v56 = vsel %vm179_vm4, 0.9, %v917_v45  ;;  %vm183_vm4 = vcmp.eq.s32.totalorder %v1529_v17, %v1268_v7 }
  0x7a   :  { %386 = vperm.xlu2 %888, %v323_v60  }
  0x7b   :  { %383 = vperm.xlu1 %887, %v322_v61   ;;  %380 = vperm.xlu0 %886, %v321_v62   ;;  %v244_v62 = vsel %vm243_vm5, 0.0, %v211_v56 }
  0x7c   :  { %v1412_v2 = vpop.permute.xlu2 %126 }
  0x7d   :  { %v1414_v6 = vpop.permute.xlu1 %93  ;;  %v1416_v8 = vpop.permute.xlu0 %87 }
  0x7e   :  { %vm182_vm6 = vcmp.eq.s32.totalorder %v1529_v17, %v1414_v6  ;;  %vm180_vm14 = vcmp.eq.s32.totalorder %v1529_v17, %v1416_v8 }
  0x7f   :  { %v214_v3 = vsel %vm182_vm6, 0.9, %v917_v45  ;;  %vm184_vm6 = vcmp.eq.s32.totalorder %v1529_v17, %v1303_v33 }
  0x80   :  { %v247_v20 = vsel %vm243_vm5, 0.0, %v214_v3 }
  0x82   :  { %395 = vperm.xlu2 %888, %v326_v9  }
  0x83   :  { %392 = vperm.xlu1 %887, %v325_v10   ;;  %389 = vperm.xlu0 %886, %v324_v12  }
  0x84   :  { %v1451_v16 = vpop.permute.xlu2 %135 }
  0x85   :  { %v1453_v11 = vpop.permute.xlu1 %105  ;;  %v1455_v34 = vpop.permute.xlu0 %102 }
  0x86   :  { %vm185_vm8 = vcmp.eq.s32.totalorder %v1529_v17, %v1455_v34  ;;  %v14_v34 = vld [vmem:[%s2078_s0] sm:$0xff] }
  0x87   :  { %v217_v5 = vsel %vm185_vm8, 0.9, %v917_v45 }
  0x88   :  { %v250_v10 = vsel %vm243_vm5, 0.0, %v217_v5 }
  0x8a   :  { %404 = vperm.xlu2 %888, %v329_v35   ;;  %v213_v35 = vsel %vm181_vm12, 0.9, %v917_v45  ;;  %vm186_vm12 = vcmp.eq.s32.totalorder %v1529_v17, %v1453_v11 }
  0x8b   :  { %401 = vperm.xlu1 %887, %v328_v37   ;;  %398 = vperm.xlu0 %886, %v327_v40   ;;  %v212_v40 = vsel %vm180_vm14, 0.9, %v917_v45  ;;  %v246_v41 = vsel %vm243_vm5, 0.0, %v213_v35 }
  0x8c   :  { %v1482_v19 = vpop.permute.xlu2 %144 }
  0x8d   :  { %v1484_v26 = vpop.permute.xlu1 %114  ;;  %v1486_v42 = vpop.permute.xlu0 %111 }
  0x8e   :  { %vm188_vm10 = vcmp.eq.s32.totalorder %v1529_v17, %v1486_v42 }
  0x8f   :  { %v220_v28 = vsel %vm188_vm10, 0.9, %v917_v45  ;;  %vm187_vm10 = vcmp.eq.s32.totalorder %v1529_v17, %v1338_v44 }
  0x90   :  { %v253_v32 = vsel %vm243_vm5, 0.0, %v220_v28  ;;  %v20_v28 = vld [vmem:[%s2078_s0 + $0x30] sm:$0xff]  ;;  %v219_v44 = vsel %vm187_vm10, 0.9, %v917_v45 }
  0x92   :  { %413 = vperm.xlu2 %888, %v332_v27  }
  0x93   :  { %410 = vperm.xlu1 %887, %v331_v4   ;;  %407 = vperm.xlu0 %886, %v330_v14   ;;  %v15_v4 = vld [vmem:[%s2078_s0 + $0x8] sm:$0xff]  ;;  %v245_v14 = vsel %vm243_vm5, 0.0, %v212_v40 }
  0x94   :  { %v1497_v15 = vpop.permute.xlu2 %153  ;;  %v19_v40 = vld [vmem:[%s2078_s0 + $0x28] sm:$0xff] }
  0x95   :  { %v1499_v47 = vpop.permute.xlu1 %123  ;;  %v1501_v48 = vpop.permute.xlu0 %120 }
  0x96   :  { %vm191_vm13 = vcmp.eq.s32.totalorder %v1529_v17, %v1501_v48  ;;  %vm192_vm10 = vcmp.eq.s32.totalorder %v1529_v17, %v1499_v47 }
  0x97   :  { %v223_v37 = vsel %vm191_vm13, 0.9, %v917_v45 }
  0x98   :  { %v256_v8 = vsel %vm243_vm5, 0.0, %v223_v37 }
  0x9a   :  { %422 = vperm.xlu2 %888, %v335_v39  }
  0x9b   :  { %419 = vperm.xlu1 %887, %v334_v29   ;;  %416 = vperm.xlu0 %886, %v333_v30  }
  0x9c   :  { %v1512_v49 = vpop.permute.xlu2 %162 }
  0x9d   :  { %v1514_v50 = vpop.permute.xlu1 %132  ;;  %v1516_v51 = vpop.permute.xlu0 %129 }
  0xa2   :  { %431 = vperm.xlu2 %888, %v338_v46   ;;  %v16_v46 = vld [vmem:[%s2078_s0 + $0x10] sm:$0xff] }
  0xa3   :  { %428 = vperm.xlu1 %887, %v337_v36   ;;  %425 = vperm.xlu0 %886, %v336_v38   ;;  %v215_v36 = vsel %vm183_vm4, 0.9, %v917_v45  ;;  %vm189_vm4 = vcmp.eq.s32.totalorder %v1529_v17, %v1484_v26 }
  0xa4   :  { %v1527_v52 = vpop.permute.xlu2 %171  ;;  %v248_v33 = vsel %vm243_vm5, 0.0, %v215_v36 }
  0xa5   :  { %v1531_v18 = vpop.permute.xlu1 %141  ;;  %v1533_v55 = vpop.permute.xlu0 %138 }
  0xab   :  { %434 = vperm.xlu0 %886, %v339_v43  }
  0xac   :  { %v342_v57 = vpop.permute.xlu2 %341 }
  0xad   :  { %v1542_v60 = vpop.permute.xlu1 %150  ;;  %v1544_v61 = vpop.permute.xlu0 %147  ;;  %vm436_vm0 = vcmp.eq.s32.totalorder %v342_v57, 1 }
  0xae   :  { %v468_v59 = vsel %vm436_vm0, %v244_v62, 0.0  ;;  %vm194_vm0 = vcmp.eq.s32.totalorder %v1529_v17, %v1516_v51  ;;  %v216_v51 = vsel %vm184_vm6, 0.9, %v917_v45  ;;  %v17_v62 = vld [vmem:[%s2078_s0 + $0x18] sm:$0xff] }
  0xaf   :  { %500 = vst [vmem:[#allocation2] sm:$0xff] %v468_v59  ;;  %v665_v31 = vmul.f32 %v468_v59, %v14_v34  ;;  %v226_v7 = vsel %vm194_vm0, 0.9, %v917_v45  ;;  %v18_v59 = vld [vmem:[%s2078_s0 + $0x20] sm:$0xff]  ;;  %v249_v3 = vsel %vm243_vm5, 0.0, %v216_v51  ;;  %v24_v51 = vld [vmem:[%s2078_s0 + $0x50] sm:$0xff] }
  0xb0   :  { %v259_v57 = vsel %vm243_vm5, 0.0, %v226_v7  ;;  %v22_v7 = vld [vmem:[%s2078_s0 + $0x40] sm:$0xff] }
  0xb4   :  { %v351_v54 = vpop.permute.xlu2 %350 }
  0xb5   :  { %v1551_v25 = vpop.permute.xlu1 %159  ;;  %v1553_v63 = vpop.permute.xlu0 %156  ;;  %vm439_vm7 = vcmp.eq.s32.totalorder %v351_v54, 1 }
  0xb6   :  { %v1557_v21 = vsel %vm439_vm7, %v247_v20, 0.0 }
  0xb7   :  { %503 = vst [vmem:[#allocation2 + $0x18] sm:$0xff] %v1557_v21 }
  0xbc   :  { %v360_v1 = vpop.permute.xlu2 %359 }
  0xbd   :  { %v1563_v6 = vpop.permute.xlu1 %168  ;;  %v1565_v9 = vpop.permute.xlu0 %165  ;;  %vm442_vm9 = vcmp.eq.s32.totalorder %v360_v1, 1  ;;  %v668_v1 = vmul.f32 %v1557_v21, %v17_v62  ;;  %v252_v21 = vsel %vm243_vm5, 0.0, %v219_v44 }
  0xbe   :  { %v1569_v12 = vsel %vm442_vm9, %v250_v10, 0.0 }
  0xbf   :  { %506 = vst [vmem:[#allocation2 + $0x30] sm:$0xff] %v1569_v12 }
  0xc4   :  { %v369_v13 = vpop.permute.xlu2 %368 }
  0xc5   :  { %v1575_v23 = vpop.permute.xlu1 %177  ;;  %v1577_v24 = vpop.permute.xlu0 %174  ;;  %vm445_vm11 = vcmp.eq.s32.totalorder %v369_v13, 1  ;;  %v218_v13 = vsel %vm186_vm12, 0.9, %v917_v45 }
  0xc6   :  { %v1581_v0 = vsel %vm445_vm11, %v253_v32, 0.0  ;;  %vm197_vm11 = vcmp.eq.s32.totalorder %v1529_v17, %v1533_v55  ;;  %v671_v32 = vmul.f32 %v1569_v12, %v20_v28  ;;  %v251_v12 = vsel %vm243_vm5, 0.0, %v218_v13  ;;  %v27_v28 = vld [vmem:[%s2078_s0 + $0x68] sm:$0xff] }
  0xc7   :  { %509 = vst [vmem:[#allocation2 + $0x48] sm:$0xff] %v1581_v0  ;;  %v229_v55 = vsel %vm197_vm11, 0.9, %v917_v45 }
  0xc8   :  { %v262_v37 = vsel %vm243_vm5, 0.0, %v229_v55 }
  0xcc   :  { %v378_v58 = vpop.permute.xlu2 %377 }
  0xcd   :  { %v348_v42 = vpop.permute.xlu1 %347  ;;  %v345_v27 = vpop.permute.xlu0 %344  ;;  %vm448_vm15 = vcmp.eq.s32.totalorder %v378_v58, 1  ;;  %697 = vadd.xlane.f32.xlu1 %v665_v31  ;;  %v21_v31 = vld [vmem:[%s2078_s0 + $0x38] sm:$0xff] }
  0xce   :  { %vm438_vm2 = vcmp.eq.s32.totalorder %v348_v42, 1  ;;  %vm437_vm1 = vcmp.eq.s32.totalorder %v345_v27, 1  ;;  %v1605_v48 = vsel %vm448_vm15, %v256_v8, 0.0 }
  0xcf   :  { %v470_v39 = vsel %vm438_vm2, %v246_v41, 0.0  ;;  %v469_v29 = vsel %vm437_vm1, %v245_v14, 0.0  ;;  %512 = vst [vmem:[#allocation2 + $0x60] sm:$0xff] %v1605_v48  ;;  %vm190_vm2 = vcmp.eq.s32.totalorder %v1529_v17, %v1373_v53  ;;  %vm200_vm1 = vcmp.eq.s32.totalorder %v1529_v17, %v1544_v61 }
  0xd0   :  { %502 = vst [vmem:[#allocation2 + $0x10] sm:$0xff] %v470_v39  ;;  %v666_v30 = vmul.f32 %v469_v29, %v15_v4  ;;  %v667_v38 = vmul.f32 %v470_v39, %v16_v46  ;;  %v23_v4 = vld [vmem:[%s2078_s0 + $0x48] sm:$0xff]  ;;  %v222_v53 = vsel %vm190_vm2, 0.9, %v917_v45  ;;  %v232_v14 = vsel %vm200_vm1, 0.9, %v917_v45 }
  0xd1   :  { %501 = vst [vmem:[#allocation2 + $0x8] sm:$0xff] %v469_v29  ;;  %v221_v61 = vsel %vm189_vm4, 0.9, %v917_v45  ;;  %v674_v39 = vmul.f32 %v1581_v0, %v23_v4  ;;  %v255_v26 = vsel %vm243_vm5, 0.0, %v222_v53  ;;  %v265_v36 = vsel %vm243_vm5, 0.0, %v232_v14 }
  0xd2   :  { %699 = vadd.xlane.f32.xlu2 %v666_v30  ;;  %v254_v0 = vsel %vm243_vm5, 0.0, %v221_v61  ;;  %vm195_vm2 = vcmp.eq.s32.totalorder %v1529_v17, %v1514_v50  ;;  %v32_v61 = vld [vmem:[%s2078_s0 + $0x90] sm:$0xff] }
  0xd4   :  { %v387_v22 = vpop.permute.xlu2 %386 }
  0xd5   :  { %v357_v43 = vpop.permute.xlu1 %356  ;;  %v354_v56 = vpop.permute.xlu0 %353  ;;  %vm451_vm7 = vcmp.eq.s32.totalorder %v387_v22, 1  ;;  %701 = vadd.xlane.f32.xlu0 %v667_v38 }
  0xd6   :  { %vm441_vm8 = vcmp.eq.s32.totalorder %v357_v43, 1  ;;  %vm440_vm9 = vcmp.eq.s32.totalorder %v354_v56, 1  ;;  %v1632_v54 = vsel %vm451_vm7, %v259_v57, 0.0  ;;  %v26_v57 = vld [vmem:[%s2078_s0 + $0x60] sm:$0xff] }
  0xd7   :  { %v473_v20 = vsel %vm441_vm8, %v249_v3, 0.0  ;;  %v472_v5 = vsel %vm440_vm9, %v248_v33, 0.0  ;;  %515 = vst [vmem:[#allocation2 + $0x78] sm:$0xff] %v1632_v54  ;;  %vm193_vm8 = vcmp.eq.s32.totalorder %v1529_v17, %v1412_v2  ;;  %vm203_vm9 = vcmp.eq.s32.totalorder %v1529_v17, %v1553_v63 }
  0xd8   :  { %505 = vst [vmem:[#allocation2 + $0x28] sm:$0xff] %v473_v20  ;;  %v669_v10 = vmul.f32 %v472_v5, %v18_v59  ;;  %v670_v27 = vmul.f32 %v473_v20, %v19_v40  ;;  %v225_v2 = vsel %vm193_vm8, 0.9, %v917_v45  ;;  %v235_v62 = vsel %vm203_vm9, 0.9, %v917_v45 }
  0xd9   :  { %504 = vst [vmem:[#allocation2 + $0x20] sm:$0xff] %v472_v5  ;;  %v224_v63 = vsel %vm192_vm10, 0.9, %v917_v45  ;;  %v677_v59 = vmul.f32 %v1605_v48, %v26_v57  ;;  %v258_v47 = vsel %vm243_vm5, 0.0, %v225_v2  ;;  %vm198_vm8 = vcmp.eq.s32.totalorder %v1529_v17, %v1531_v18  ;;  %v35_v57 = vld [vmem:[%s2078_s0 + $0xa8] sm:$0xff] }
  0xda   :  { %703 = vadd.xlane.f32.xlu2 %v668_v1  ;;  %705 = vadd.xlane.f32.xlu1 %v669_v10  ;;  %v268_v1 = vsel %vm243_vm5, 0.0, %v235_v62  ;;  %v25_v10 = vld [vmem:[%s2078_s0 + $0x58] sm:$0xff]  ;;  %v257_v48 = vsel %vm243_vm5, 0.0, %v224_v63 }
  0xdc   :  { %v396_v11 = vpop.permute.xlu2 %395 }
  0xdd   :  { %v366_v34 = vpop.permute.xlu1 %365  ;;  %v363_v35 = vpop.permute.xlu0 %362  ;;  %vm454_vm13 = vcmp.eq.s32.totalorder %v396_v11, 1  ;;  %709 = vadd.xlane.f32.xlu0 %v671_v32 }
  0xde   :  { %vm444_vm14 = vcmp.eq.s32.totalorder %v366_v34, 1  ;;  %vm443_vm15 = vcmp.eq.s32.totalorder %v363_v35, 1  ;;  %v1661_v58 = vsel %vm454_vm13, %v262_v37, 0.0 }
  0xdf   :  { %v476_v41 = vsel %vm444_vm14, %v252_v21, 0.0  ;;  %v475_v42 = vsel %vm443_vm15, %v251_v12, 0.0  ;;  %518 = vst [vmem:[#allocation2 + $0x90] sm:$0xff] %v1661_v58  ;;  %vm196_vm14 = vcmp.eq.s32.totalorder %v1529_v17, %v1451_v16  ;;  %vm206_vm15 = vcmp.eq.s32.totalorder %v1529_v17, %v1565_v9  ;;  %v29_v21 = vld [vmem:[%s2078_s0 + $0x78] sm:$0xff] }
  0xe0   :  { %508 = vst [vmem:[#allocation2 + $0x40] sm:$0xff] %v476_v41  ;;  %v672_v8 = vmul.f32 %v475_v42, %v21_v31  ;;  %v673_v33 = vmul.f32 %v476_v41, %v22_v7  ;;  %v228_v16 = vsel %vm196_vm14, 0.9, %v917_v45  ;;  %v238_v34 = vsel %vm206_vm15, 0.9, %v917_v45  ;;  %v28_v41 = vld [vmem:[%s2078_s0 + $0x70] sm:$0xff] }
  0xe1   :  { %507 = vst [vmem:[#allocation2 + $0x38] sm:$0xff] %v475_v42  ;;  %v227_v9 = vsel %vm195_vm2, 0.9, %v917_v45  ;;  %v680_v35 = vmul.f32 %v1632_v54, %v29_v21  ;;  %v261_v50 = vsel %vm243_vm5, 0.0, %v228_v16  ;;  %v271_v12 = vsel %vm243_vm5, 0.0, %v238_v34  ;;  %v30_v42 = vld [vmem:[%s2078_s0 + $0x80] sm:$0xff] }
  0xe2   :  { %707 = vadd.xlane.f32.xlu2 %v670_v27  ;;  %711 = vadd.xlane.f32.xlu1 %v672_v8  ;;  %v260_v54 = vsel %vm243_vm5, 0.0, %v227_v9  ;;  %v31_v7 = vld [vmem:[%s2078_s0 + $0x88] sm:$0xff]  ;;  %vm205_vm2 = vcmp.eq.s32.totalorder %v1529_v17, %v1512_v49 }
  0xe4   :  { %v405_v29 = vpop.permute.xlu2 %404 }
  0xe5   :  { %v375_v30 = vpop.permute.xlu1 %374  ;;  %v372_v46 = vpop.permute.xlu0 %371  ;;  %vm457_vm0 = vcmp.eq.s32.totalorder %v405_v29, 1  ;;  %715 = vadd.xlane.f32.xlu0 %v674_v39  ;;  %v683_v29 = vmul.f32 %v1661_v58, %v32_v61 }
  0xe6   :  { %vm447_vm6 = vcmp.eq.s32.totalorder %v375_v30, 1  ;;  %vm446_vm7 = vcmp.eq.s32.totalorder %v372_v46, 1  ;;  %v1689_v38 = vsel %vm457_vm0, %v265_v36, 0.0 }
  0xe7   :  { %v479_v22 = vsel %vm447_vm6, %v255_v26, 0.0  ;;  %v478_v43 = vsel %vm446_vm7, %v254_v0, 0.0  ;;  %521 = vst [vmem:[#allocation2 + $0xa8] sm:$0xff] %v1689_v38  ;;  %vm199_vm6 = vcmp.eq.s32.totalorder %v1529_v17, %v1482_v19  ;;  %vm209_vm7 = vcmp.eq.s32.totalorder %v1529_v17, %v1577_v24 }
  0xe8   :  { %511 = vst [vmem:[#allocation2 + $0x58] sm:$0xff] %v479_v22  ;;  %v675_v56 = vmul.f32 %v478_v43, %v24_v51  ;;  %v676_v32 = vmul.f32 %v479_v22, %v25_v10  ;;  %v231_v19 = vsel %vm199_vm6, 0.9, %v917_v45  ;;  %v241_v39 = vsel %vm209_vm7, 0.9, %v917_v45  ;;  %v33_v51 = vld [vmem:[%s2078_s0 + $0x98] sm:$0xff] }
  0xe9   :  { %510 = vst [vmem:[#allocation2 + $0x50] sm:$0xff] %v478_v43  ;;  %v230_v24 = vsel %vm198_vm8, 0.9, %v917_v45  ;;  %v264_v18 = vsel %vm243_vm5, 0.0, %v231_v19  ;;  %v274_v36 = vsel %vm243_vm5, 0.0, %v241_v39  ;;  %v686_v63 = vmul.f32 %v1689_v38, %v35_v57  ;;  %v43_v39 = vld [vmem:[%s2078_s0 + $0xe8] sm:$0xff] }
  0xea   :  { %713 = vadd.xlane.f32.xlu2 %v673_v33  ;;  %717 = vadd.xlane.f32.xlu1 %v675_v56  ;;  %v263_v58 = vsel %vm243_vm5, 0.0, %v230_v24  ;;  %vm208_vm6 = vcmp.eq.s32.totalorder %v1529_v17, %v1527_v52  ;;  %vm207_vm7 = vcmp.eq.s32.totalorder %v1529_v17, %v1563_v6  ;;  %v40_v6 = vld [vmem:[%s2078_s0 + $0xd0] sm:$0xff]  ;;  %v45_v24 = vld [vmem:[%s2078_s0 + $0xf8] sm:$0xff] }
  0xec   :  { %v414_v3 = vpop.permute.xlu2 %413 }
  0xed   :  { %v384_v20 = vpop.permute.xlu1 %383  ;;  %v381_v5 = vpop.permute.xlu0 %380  ;;  %vm460_vm11 = vcmp.eq.s32.totalorder %v414_v3, 1  ;;  %721 = vadd.xlane.f32.xlu0 %v677_v59  ;;  %v36_v3 = vld [vmem:[%s2078_s0 + $0xb0] sm:$0xff] }
  0xee   :  { %vm450_vm12 = vcmp.eq.s32.totalorder %v384_v20, 1  ;;  %vm449_vm13 = vcmp.eq.s32.totalorder %v381_v5, 1  ;;  %v1717_v44 = vsel %vm460_vm11, %v268_v1, 0.0 }
  0xef   :  { %v482_v55 = vsel %vm450_vm12, %v258_v47, 0.0  ;;  %v481_v13 = vsel %vm449_vm13, %v257_v48, 0.0  ;;  %524 = vst [vmem:[#allocation2 + $0xc0] sm:$0xff] %v1717_v44  ;;  %vm202_vm12 = vcmp.eq.s32.totalorder %v1529_v17, %v1497_v15  ;;  %vm201_vm13 = vcmp.eq.s32.totalorder %v1529_v17, %v1542_v60  ;;  %v34_v60 = vld [vmem:[%s2078_s0 + $0xa0] sm:$0xff] }
  0xf0   :  { %514 = vst [vmem:[#allocation2 + $0x70] sm:$0xff] %v482_v55  ;;  %v678_v11 = vmul.f32 %v481_v13, %v27_v28  ;;  %v679_v53 = vmul.f32 %v482_v55, %v28_v41  ;;  %v234_v2 = vsel %vm202_vm12, 0.9, %v917_v45  ;;  %v233_v62 = vsel %vm201_vm13, 0.9, %v917_v45  ;;  %v38_v28 = vld [vmem:[%s2078_s0 + $0xc0] sm:$0xff] }
  0xf1   :  { %513 = vst [vmem:[#allocation2 + $0x68] sm:$0xff] %v481_v13  ;;  %v267_v47 = vsel %vm243_vm5, 0.0, %v234_v2  ;;  %v266_v20 = vsel %vm243_vm5, 0.0, %v233_v62  ;;  %v237_v48 = vsel %vm205_vm2, 0.9, %v917_v45  ;;  %v689_v13 = vmul.f32 %v1717_v44, %v38_v28  ;;  %v42_v41 = vld [vmem:[%s2078_s0 + $0xe0] sm:$0xff] }
  0xf2   :  { %719 = vadd.xlane.f32.xlu2 %v676_v32  ;;  %723 = vadd.xlane.f32.xlu1 %v678_v11  ;;  %v39_v11 = vld [vmem:[%s2078_s0 + $0xc8] sm:$0xff]  ;;  %v270_v21 = vsel %vm243_vm5, 0.0, %v237_v48  ;;  %v641_v48 = vld [vmem:[%s2080_s2 + $0x40] sm:$0xff] }
  0xf4   :  { %v423_v37 = vpop.permute.xlu2 %422 }
  0xf5   :  { %v393_v40 = vpop.permute.xlu1 %392  ;;  %v390_v31 = vpop.permute.xlu0 %389  ;;  %vm463_vm1 = vcmp.eq.s32.totalorder %v423_v37, 1  ;;  %727 = vadd.xlane.f32.xlu0 %v680_v35  ;;  %v41_v37 = vld [vmem:[%s2078_s0 + $0xd8] sm:$0xff] }
  0xf6   :  { %vm453_vm4 = vcmp.eq.s32.totalorder %v393_v40, 1  ;;  %vm452_vm0 = vcmp.eq.s32.totalorder %v390_v31, 1  ;;  %v1745_v27 = vsel %vm463_vm1, %v271_v12, 0.0  ;;  %vm204_vm1 = vcmp.eq.s32.totalorder %v1529_v17, %v1551_v25  ;;  %v37_v25 = vld [vmem:[%s2078_s0 + $0xb8] sm:$0xff] }
  0xf7   :  { %v485_v8 = vsel %vm453_vm4, %v261_v50, 0.0  ;;  %v484_v4 = vsel %vm452_vm0, %v260_v54, 0.0  ;;  %527 = vst [vmem:[#allocation2 + $0xd8] sm:$0xff] %v1745_v27  ;;  %v236_v55 = vsel %vm204_vm1, 0.9, %v917_v45  ;;  %v692_v31 = vmul.f32 %v1745_v27, %v41_v37 }
  0xf8   :  { %517 = vst [vmem:[#allocation2 + $0x88] sm:$0xff] %v485_v8  ;;  %v681_v14 = vmul.f32 %v484_v4, %v30_v42  ;;  %v682_v33 = vmul.f32 %v485_v8, %v31_v7  ;;  %v269_v16 = vsel %vm243_vm5, 0.0, %v236_v55  ;;  %v240_v50 = vsel %vm208_vm6, 0.9, %v917_v45  ;;  %v643_v55 = vld [vmem:[%s2080_s2 + $0x50] sm:$0xff] }
  0xf9   :  { %516 = vst [vmem:[#allocation2 + $0x80] sm:$0xff] %v484_v4  ;;  %v239_v40 = vsel %vm207_vm7, 0.9, %v917_v45  ;;  %v273_v42 = vsel %vm243_vm5, 0.0, %v240_v50 }
  0xfa   :  { %725 = vadd.xlane.f32.xlu2 %v679_v53  ;;  %729 = vadd.xlane.f32.xlu1 %v681_v14  ;;  %v272_v54 = vsel %vm243_vm5, 0.0, %v239_v40  ;;  %v44_v14 = vld [vmem:[%s2078_s0 + $0xf0] sm:$0xff]  ;;  %v648_v40 = vld [vmem:[%s2080_s2 + $0x78] sm:$0xff] }
  0xfc   :  { %v432_v26 = vpop.permute.xlu2 %431 }
  0xfd   :  { %v402_v30 = vpop.permute.xlu1 %401  ;;  %v399_v46 = vpop.permute.xlu0 %398  ;;  %vm466_vm9 = vcmp.eq.s32.totalorder %v432_v26, 1  ;;  %733 = vadd.xlane.f32.xlu0 %v683_v29 }
  0xfe   :  { %vm456_vm10 = vcmp.eq.s32.totalorder %v402_v30, 1  ;;  %vm455_vm11 = vcmp.eq.s32.totalorder %v399_v46, 1  ;;  %v1773_v0 = vsel %vm466_vm9, %v274_v36, 0.0  ;;  %v633_v30 = vld [vmem:[%s2080_s2] sm:$0xff] }
  0xff   :  { %v488_v22 = vsel %vm456_vm10, %v264_v18, 0.0  ;;  %v487_v43 = vsel %vm455_vm11, %v263_v58, 0.0  ;;  %530 = vst [vmem:[#allocation2 + $0xf0] sm:$0xff] %v1773_v0  ;;  %vm210_vm10 = vcmp.eq.s32.totalorder %v1529_v17, %v1575_v23  ;;  %v695_v23 = vmul.f32 %v1773_v0, %v44_v14  ;;  %v634_v17 = vld [vmem:[%s2080_s2 + $0x8] sm:$0xff]  ;;  %v635_v58 = vld [vmem:[%s2080_s2 + $0x10] sm:$0xff] }
 0x100   :  { %520 = vst [vmem:[#allocation2 + $0xa0] sm:$0xff] %v488_v22  ;;  %v684_v56 = vmul.f32 %v487_v43, %v33_v51  ;;  %v685_v1 = vmul.f32 %v488_v22, %v34_v60  ;;  %v242_v61 = vsel %vm210_vm10, 0.9, %v917_v45  ;;  %v638_v60 = vld [vmem:[%s2080_s2 + $0x28] sm:$0xff] }
 0x101   :  { %519 = vst [vmem:[#allocation2 + $0x98] sm:$0xff] %v487_v43  ;;  %v275_v29 = vsel %vm243_vm5, 0.0, %v242_v61  ;;  %v636_v43 = vld [vmem:[%s2080_s2 + $0x18] sm:$0xff]  ;;  %v650_v14 = vld [vmem:[%s2080_s2 + $0x88] sm:$0xff] }
 0x102   :  { %731 = vadd.xlane.f32.xlu2 %v682_v33  ;;  %735 = vadd.xlane.f32.xlu1 %v684_v56  ;;  %v637_v33 = vld [vmem:[%s2080_s2 + $0x20] sm:$0xff]  ;;  %v652_v61 = vld [vmem:[%s2080_s2 + $0x98] sm:$0xff] }
 0x105   :  { %v411_v15 = vpop.permute.xlu1 %410  ;;  %v408_v59 = vpop.permute.xlu0 %407  ;;  %739 = vadd.xlane.f32.xlu0 %v686_v63  ;;  %v639_v63 = vld [vmem:[%s2080_s2 + $0x30] sm:$0xff] }
 0x106   :  { %vm459_vm14 = vcmp.eq.s32.totalorder %v411_v15, 1  ;;  %vm458_vm15 = vcmp.eq.s32.totalorder %v408_v59, 1 }
 0x107   :  { %v491_v38 = vsel %vm459_vm14, %v267_v47, 0.0  ;;  %v490_v5 = vsel %vm458_vm15, %v266_v20, 0.0 }
 0x108   :  { %523 = vst [vmem:[#allocation2 + $0xb8] sm:$0xff] %v491_v38  ;;  %v687_v10 = vmul.f32 %v490_v5, %v36_v3  ;;  %v688_v9 = vmul.f32 %v491_v38, %v37_v25  ;;  %v640_v3 = vld [vmem:[%s2080_s2 + $0x38] sm:$0xff] }
 0x109   :  { %522 = vst [vmem:[#allocation2 + $0xb0] sm:$0xff] %v490_v5 }
 0x10a   :  { %737 = vadd.xlane.f32.xlu2 %v685_v1  ;;  %741 = vadd.xlane.f32.xlu1 %v687_v10  ;;  %v642_v1 = vld [vmem:[%s2080_s2 + $0x48] sm:$0xff] }
 0x10d   :  { %v420_v49 = vpop.permute.xlu1 %419  ;;  %v417_v32 = vpop.permute.xlu0 %416  ;;  %745 = vadd.xlane.f32.xlu0 %v689_v13 }
 0x10e   :  { %vm462_vm4 = vcmp.eq.s32.totalorder %v420_v49, 1  ;;  %vm461_vm0 = vcmp.eq.s32.totalorder %v417_v32, 1 }
 0x10f   :  { %v494_v44 = vsel %vm462_vm4, %v270_v21, 0.0  ;;  %v493_v34 = vsel %vm461_vm0, %v269_v16, 0.0 }
 0x110   :  { %526 = vst [vmem:[#allocation2 + $0xd0] sm:$0xff] %v494_v44  ;;  %v690_v35 = vmul.f32 %v493_v34, %v39_v11  ;;  %v691_v4 = vmul.f32 %v494_v44, %v40_v6  ;;  %v645_v11 = vld [vmem:[%s2080_s2 + $0x60] sm:$0xff]  ;;  %v644_v44 = vld [vmem:[%s2080_s2 + $0x58] sm:$0xff] }
 0x111   :  { %525 = vst [vmem:[#allocation2 + $0xc8] sm:$0xff] %v493_v34  ;;  %v646_v34 = vld [vmem:[%s2080_s2 + $0x68] sm:$0xff]  ;;  %v649_v6 = vld [vmem:[%s2080_s2 + $0x80] sm:$0xff] }
 0x112   :  { %743 = vadd.xlane.f32.xlu2 %v688_v9  ;;  %747 = vadd.xlane.f32.xlu1 %v690_v35 }
 0x115   :  { %v429_v52 = vpop.permute.xlu1 %428  ;;  %v426_v12 = vpop.permute.xlu0 %425  ;;  %751 = vadd.xlane.f32.xlu0 %v692_v31 }
 0x116   :  { %vm465_vm8 = vcmp.eq.s32.totalorder %v429_v52, 1  ;;  %vm464_vm9 = vcmp.eq.s32.totalorder %v426_v12, 1  ;;  %v647_v12 = vld [vmem:[%s2080_s2 + $0x70] sm:$0xff] }
 0x117   :  { %v497_v27 = vsel %vm465_vm8, %v273_v42, 0.0  ;;  %v496_v8 = vsel %vm464_vm9, %v272_v54, 0.0 }
 0x118   :  { %529 = vst [vmem:[#allocation2 + $0xe8] sm:$0xff] %v497_v27  ;;  %v693_v53 = vmul.f32 %v496_v8, %v42_v41  ;;  %v694_v45 = vmul.f32 %v497_v27, %v43_v39 }
 0x119   :  { %528 = vst [vmem:[#allocation2 + $0xe0] sm:$0xff] %v496_v8  ;;  %v651_v8 = vld [vmem:[%s2080_s2 + $0x90] sm:$0xff] }
 0x11a   :  { %749 = vadd.xlane.f32.xlu2 %v691_v4  ;;  %753 = vadd.xlane.f32.xlu1 %v693_v53 }
 0x11d   :  { %v435_v19 = vpop.permute.xlu0 %434  ;;  %757 = vadd.xlane.f32.xlu0 %v695_v23 }
 0x11e   :  { %vm467_vm11 = vcmp.eq.s32.totalorder %v435_v19, 1 }
 0x11f   :  { %v499_v26 = vsel %vm467_vm11, %v275_v29, 0.0  ;;  %v654_v29 = vld [vmem:[%s2080_s2 + $0xa8] sm:$0xff] }
 0x120   :  { %531 = vst [vmem:[#allocation2 + $0xf8] sm:$0xff] %v499_v26  ;;  %v696_v18 = vmul.f32 %v499_v26, %v45_v24 }
 0x121   :  { %840 = dma.vmem_to_hbm [thread:$0]  %s833_s8, 4096, %s835_s11, [#allocation3], %s919_s3, %s919_s3, %s920_s16  }
 0x122   :  { %755 = vadd.xlane.f32.xlu2 %v694_v45  ;;  %759 = vadd.xlane.f32.xlu1 %v696_v18  ;;  %v653_v18 = vld [vmem:[%s2080_s2 + $0xa0] sm:$0xff] }
 0x140   :  { %v698_v46 = vpop.xlane.xlu1 %697 }
 0x141   :  { %v761_v36 = vsub.f32 %v633_v30, %v698_v46  ;;  %v655_v30 = vld [vmem:[%s2080_s2 + $0xb0] sm:$0xff] }
 0x143   :  { %794 = vst.msk [vmem:[%s2080_s2] sm:$0xff] %vm600_vm3, %v761_v36 }
 0x145   :  { %v700_v7 = vpop.xlane.xlu2 %699 }
 0x146   :  { %v762_v51 = vsub.f32 %v634_v17, %v700_v7 }
 0x148   :  { %795 = vst.msk [vmem:[%s2080_s2 + $0x8] sm:$0xff] %vm600_vm3, %v762_v51  ;;  %v702_v0 = vpop.xlane.xlu0 %701  ;;  %v657_v51 = vld [vmem:[%s2080_s2 + $0xc0] sm:$0xff] }
 0x149   :  { %v763_v22 = vsub.f32 %v635_v58, %v702_v0 }
 0x14b   :  { %796 = vst.msk [vmem:[%s2080_s2 + $0x10] sm:$0xff] %vm600_vm3, %v763_v22  ;;  %v656_v22 = vld [vmem:[%s2080_s2 + $0xb8] sm:$0xff] }
 0x14d   :  { %v704_v56 = vpop.xlane.xlu2 %703  ;;  %v706_v57 = vpop.xlane.xlu1 %705 }
 0x14e   :  { %v764_v2 = vsub.f32 %v636_v43, %v704_v56  ;;  %v765_v62 = vsub.f32 %v637_v33, %v706_v57  ;;  %v658_v43 = vld [vmem:[%s2080_s2 + $0xc8] sm:$0xff] }
 0x150   :  { %797 = vst.msk [vmem:[%s2080_s2 + $0x18] sm:$0xff] %vm600_vm3, %v764_v2  ;;  %v710_v15 = vpop.xlane.xlu0 %709 }
 0x151   :  { %798 = vst.msk [vmem:[%s2080_s2 + $0x20] sm:$0xff] %vm600_vm3, %v765_v62  ;;  %v767_v59 = vsub.f32 %v639_v63, %v710_v15  ;;  %v660_v62 = vld [vmem:[%s2080_s2 + $0xd8] sm:$0xff] }
 0x153   :  { %800 = vst.msk [vmem:[%s2080_s2 + $0x30] sm:$0xff] %vm600_vm3, %v767_v59  ;;  %v659_v59 = vld [vmem:[%s2080_s2 + $0xd0] sm:$0xff] }
 0x155   :  { %v708_v47 = vpop.xlane.xlu2 %707  ;;  %v712_v20 = vpop.xlane.xlu1 %711 }
 0x156   :  { %v766_v38 = vsub.f32 %v638_v60, %v708_v47  ;;  %v768_v5 = vsub.f32 %v640_v3, %v712_v20  ;;  %v661_v60 = vld [vmem:[%s2080_s2 + $0xe0] sm:$0xff] }
 0x158   :  { %799 = vst.msk [vmem:[%s2080_s2 + $0x28] sm:$0xff] %vm600_vm3, %v766_v38  ;;  %v716_v10 = vpop.xlane.xlu0 %715 }
 0x159   :  { %801 = vst.msk [vmem:[%s2080_s2 + $0x38] sm:$0xff] %vm600_vm3, %v768_v5  ;;  %v770_v28 = vsub.f32 %v642_v1, %v716_v10  ;;  %v663_v5 = vld [vmem:[%s2080_s2 + $0xf0] sm:$0xff] }
 0x15b   :  { %803 = vst.msk [vmem:[%s2080_s2 + $0x48] sm:$0xff] %vm600_vm3, %v770_v28  ;;  %v662_v28 = vld [vmem:[%s2080_s2 + $0xe8] sm:$0xff] }
 0x15d   :  { %v714_v13 = vpop.xlane.xlu2 %713  ;;  %v718_v49 = vpop.xlane.xlu1 %717 }
 0x15e   :  { %v769_v32 = vsub.f32 %v641_v48, %v714_v13  ;;  %v771_v25 = vsub.f32 %v643_v55, %v718_v49  ;;  %v664_v48 = vld [vmem:[%s2080_s2 + $0xf8] sm:$0xff] }
 0x160   :  { %802 = vst.msk [vmem:[%s2080_s2 + $0x40] sm:$0xff] %vm600_vm3, %v769_v32  ;;  %v722_v21 = vpop.xlane.xlu0 %721 }
 0x161   :  { %804 = vst.msk [vmem:[%s2080_s2 + $0x50] sm:$0xff] %vm600_vm3, %v771_v25  ;;  %v773_v16 = vsub.f32 %v645_v11, %v722_v21 }
 0x163   :  { %806 = vst.msk [vmem:[%s2080_s2 + $0x60] sm:$0xff] %vm600_vm3, %v773_v16 }
 0x165   :  { %v720_v9 = vpop.xlane.xlu2 %719  ;;  %v724_v35 = vpop.xlane.xlu1 %723 }
 0x166   :  { %v772_v37 = vsub.f32 %v644_v44, %v720_v9  ;;  %v774_v50 = vsub.f32 %v646_v34, %v724_v35 }
 0x168   :  { %805 = vst.msk [vmem:[%s2080_s2 + $0x58] sm:$0xff] %vm600_vm3, %v772_v37  ;;  %v728_v31 = vpop.xlane.xlu0 %727 }
 0x169   :  { %807 = vst.msk [vmem:[%s2080_s2 + $0x68] sm:$0xff] %vm600_vm3, %v774_v50  ;;  %v776_v52 = vsub.f32 %v648_v40, %v728_v31 }
 0x16b   :  { %809 = vst.msk [vmem:[%s2080_s2 + $0x78] sm:$0xff] %vm600_vm3, %v776_v52 }
 0x16d   :  { %v726_v41 = vpop.xlane.xlu2 %725  ;;  %v730_v42 = vpop.xlane.xlu1 %729 }
 0x16e   :  { %v775_v54 = vsub.f32 %v647_v12, %v726_v41  ;;  %v777_v27 = vsub.f32 %v649_v6, %v730_v42 }
 0x170   :  { %808 = vst.msk [vmem:[%s2080_s2 + $0x70] sm:$0xff] %vm600_vm3, %v775_v54  ;;  %v734_v4 = vpop.xlane.xlu0 %733 }
 0x171   :  { %810 = vst.msk [vmem:[%s2080_s2 + $0x80] sm:$0xff] %vm600_vm3, %v777_v27  ;;  %v779_v53 = vsub.f32 %v651_v8, %v734_v4 }
 0x173   :  { %812 = vst.msk [vmem:[%s2080_s2 + $0x90] sm:$0xff] %vm600_vm3, %v779_v53 }
 0x175   :  { %v732_v23 = vpop.xlane.xlu2 %731  ;;  %v736_v19 = vpop.xlane.xlu1 %735 }
 0x176   :  { %v778_v39 = vsub.f32 %v650_v14, %v732_v23  ;;  %v780_v24 = vsub.f32 %v652_v61, %v736_v19 }
 0x178   :  { %811 = vst.msk [vmem:[%s2080_s2 + $0x88] sm:$0xff] %vm600_vm3, %v778_v39  ;;  %v740_v26 = vpop.xlane.xlu0 %739 }
 0x179   :  { %813 = vst.msk [vmem:[%s2080_s2 + $0x98] sm:$0xff] %vm600_vm3, %v780_v24  ;;  %v782_v45 = vsub.f32 %v654_v29, %v740_v26 }
 0x17b   :  { %815 = vst.msk [vmem:[%s2080_s2 + $0xa8] sm:$0xff] %vm600_vm3, %v782_v45 }
 0x17d   :  { %v738_v46 = vpop.xlane.xlu2 %737  ;;  %v742_v36 = vpop.xlane.xlu1 %741 }
 0x17e   :  { %v781_v17 = vsub.f32 %v653_v18, %v738_v46  ;;  %v783_v7 = vsub.f32 %v655_v30, %v742_v36 }
 0x180   :  { %814 = vst.msk [vmem:[%s2080_s2 + $0xa0] sm:$0xff] %vm600_vm3, %v781_v17  ;;  %v746_v58 = vpop.xlane.xlu0 %745 }
 0x181   :  { %816 = vst.msk [vmem:[%s2080_s2 + $0xb0] sm:$0xff] %vm600_vm3, %v783_v7  ;;  %v785_v0 = vsub.f32 %v657_v51, %v746_v58 }
 0x183   :  { %818 = vst.msk [vmem:[%s2080_s2 + $0xc0] sm:$0xff] %vm600_vm3, %v785_v0 }
 0x185   :  { %v744_v33 = vpop.xlane.xlu2 %743  ;;  %v748_v56 = vpop.xlane.xlu1 %747 }
 0x186   :  { %v784_v57 = vsub.f32 %v656_v22, %v744_v33  ;;  %v786_v2 = vsub.f32 %v658_v43, %v748_v56 }
 0x188   :  { %817 = vst.msk [vmem:[%s2080_s2 + $0xb8] sm:$0xff] %vm600_vm3, %v784_v57  ;;  %v752_v63 = vpop.xlane.xlu0 %751 }
 0x189   :  { %819 = vst.msk [vmem:[%s2080_s2 + $0xc8] sm:$0xff] %vm600_vm3, %v786_v2  ;;  %v788_v15 = vsub.f32 %v660_v62, %v752_v63 }
 0x18b   :  { %821 = vst.msk [vmem:[%s2080_s2 + $0xd8] sm:$0xff] %vm600_vm3, %v788_v15 }
 0x18d   :  { %v750_v3 = vpop.xlane.xlu2 %749  ;;  %v754_v47 = vpop.xlane.xlu1 %753 }
 0x18e   :  { %v787_v20 = vsub.f32 %v659_v59, %v750_v3  ;;  %v789_v38 = vsub.f32 %v661_v60, %v754_v47 }
 0x190   :  { %820 = vst.msk [vmem:[%s2080_s2 + $0xd0] sm:$0xff] %vm600_vm3, %v787_v20  ;;  %v758_v1 = vpop.xlane.xlu0 %757 }
 0x191   :  { %822 = vst.msk [vmem:[%s2080_s2 + $0xe0] sm:$0xff] %vm600_vm3, %v789_v38  ;;  %v791_v10 = vsub.f32 %v663_v5, %v758_v1 }
 0x193   :  { %824 = vst.msk [vmem:[%s2080_s2 + $0xf0] sm:$0xff] %vm600_vm3, %v791_v10 }
 0x195   :  { %v756_v55 = vpop.xlane.xlu2 %755  ;;  %v760_v13 = vpop.xlane.xlu1 %759 }
 0x196   :  { %v790_v49 = vsub.f32 %v662_v28, %v756_v55  ;;  %v792_v32 = vsub.f32 %v664_v48, %v760_v13 }
 0x198   :  { %823 = vst.msk [vmem:[%s2080_s2 + $0xe8] sm:$0xff] %vm600_vm3, %v790_v49 }
 0x199   :  { %825 = vst.msk [vmem:[%s2080_s2 + $0xf8] sm:$0xff] %vm600_vm3, %v792_v32 }
 0x19a   :  { %913 = dma.done.wait [#allocation3], 4096  }
 0x19b   :  { %914 = vsyncadd [#allocation3], 4294963200 }
 0x19c   :  { %847 = vsyncpa [#allocation3], 1 }

</bundles_post_ra>
